<compile_context>
chip_gen: v7x
topology: tpu7x:2x2x1
jax: 0.10.0
libtpu: 0.0.40
codegen_flags: <defaults>
</compile_context>

<pallas_src>
import functools

import jax
import jax.numpy as jnp
from jax.experimental import pallas as pl
from jax.experimental.pallas import tpu as pltpu


BN_EPS = 1e-5


def _round_up(v, m):
    return ((v + m - 1) // m) * m


# ----------------------------------------------------------------------------
# Kernel 1: conv (as matmul) + skip placement + per-channel sum / sumsq stats.
# ----------------------------------------------------------------------------
def conv_concat_stats_kernel(p_ref, w_ref, s_ref, z_ref, sum_ref, sq_ref):
    # p_ref: (TM, K_pad) bf16 im2col rows of the dilated input
    # w_ref: (K_pad, C_pad) bf16 conv weight (resident across M tiles)
    # s_ref: (TM, C_pad) f32 skip features placed at channel offset Cout
    # z_ref: (TM, C_pad) f32 pre-BN concatenated activations
    # sum_ref/sq_ref: (1, C_pad) f32 accumulators (resident across M tiles)
    @pl.when(pl.program_id(0) == 0)
    def _():
        sum_ref[...] = jnp.zeros_like(sum_ref)
        sq_ref[...] = jnp.zeros_like(sq_ref)

    z = jnp.dot(p_ref[...], w_ref[...], preferred_element_type=jnp.float32)
    z = z + s_ref[...]              # channel concat: skip lives in cols [Cout:Cout+Cskip]
    z_ref[...] = z
    sum_ref[...] += jnp.sum(z, axis=0, keepdims=True)
    sq_ref[...] += jnp.sum(z * z, axis=0, keepdims=True)


# ----------------------------------------------------------------------------
# Kernel 2: folded BN (per-channel scale/shift) + ReLU, lane-dense store.
# ----------------------------------------------------------------------------
def scale_shift_relu_kernel(z_ref, scale_ref, shift_ref, o_ref):
    o_ref[...] = jnp.maximum(z_ref[...] * scale_ref[...] + shift_ref[...], 0.0)


# ----------------------------------------------------------------------------
# Host-side layout helpers.
# ----------------------------------------------------------------------------
def _im2col_stride1(xp, kh, kw, oh, ow):
    # xp: (N, Cin, Hp, Wp) already padded. Returns (N*OH*OW, Cin*KH*KW), rows
    # row-major over (n, oh, ow), columns ordered (ci, kh, kw) to match the
    # (Cout, Cin, KH, KW) weight reshape.
    n, cin, _, _ = xp.shape
    slices = []
    for ih in range(kh):
        for iw in range(kw):
            slices.append(xp[:, :, ih:ih + oh, iw:iw + ow])      # (N, Cin, OH, OW)
    patches = jnp.stack(slices, axis=2)                           # (N, Cin, KH*KW, OH, OW)
    patches = patches.reshape(n, cin * kh * kw, oh, ow)
    patches = patches.transpose(0, 2, 3, 1).reshape(n * oh * ow, cin * kh * kw)
    return patches


# ----------------------------------------------------------------------------
# DecoderBlock forward.
# ----------------------------------------------------------------------------
@functools.partial(jax.jit, static_argnames=("apply_batchnorm", "tm"))
def decoder_block(x, feat, w_t, bias, gamma, beta, *, apply_batchnorm=True, tm=256):
    """x: (N, Cin, H, W); feat: (N, Cskip, 2H, 2W); w_t: (Cin, Cout, 4, 4) PyTorch
    ConvTranspose2d weight; bias: (Cout,); gamma/beta: (Cout+Cskip,). Returns NCHW."""
    f32 = jnp.float32
    n, cin, hin, win = x.shape
    cin_w, cout, kh, kw = w_t.shape
    assert cin_w == cin and (kh, kw) == (4, 4)
    nf, cskip, hf, wf = feat.shape
    oh, ow = 2 * hin, 2 * win                     # ConvTranspose2d(4,2,1) doubles H,W
    # TODO(synk): F.interpolate(nearest) resize path when conv output spatial !=
    # feat spatial; not needed when sizes align (the usual UNet case).
    assert (hf, wf) == (oh, ow), "interpolate path not implemented"

    m = n * oh * ow
    c = cout + cskip
    k = cin * kh * kw

    c_pad = _round_up(c, 128)                     # lane-dense channels
    k_pad = _round_up(k, 128)                     # MXU-aligned contraction dim
    tm = min(tm, _round_up(m, 8))                 # row tile (multiple of 8 sublanes)
    m_pad = _round_up(m, tm)
    mt = m_pad // tm

    # --- ConvTranspose2d as a stride-1 conv over the zero-inserted input -----
    x_dil = jnp.zeros((n, cin, 2 * hin - 1, 2 * win - 1), f32)
    x_dil = x_dil.at[:, :, ::2, ::2].set(x.astype(f32))
    xp = jnp.pad(x_dil, ((0, 0), (0, 0), (2, 2), (2, 2)))         # pad = k - 1 - p = 2

    patches = _im2col_stride1(xp, kh, kw, oh, ow)                 # (m, k) f32
    patches = jnp.pad(patches, ((0, m_pad - m), (0, k_pad - k))).astype(jnp.bfloat16)

    # Flipped / transposed ConvTranspose weight -> regular-conv weight -> (K, Cout).
    w_conv = jnp.flip(w_t.astype(f32), axis=(2, 3)).transpose(1, 0, 2, 3)   # (Cout,Cin,4,4)
    w2d = w_conv.reshape(cout, k).T                                          # (K, Cout)
    w2d = jnp.pad(w2d, ((0, k_pad - k), (0, c_pad - cout))).astype(jnp.bfloat16)

    # Skip features placed at channel offset Cout (this *is* the concat).
    feat2d = feat.astype(f32).transpose(0, 2, 3, 1).reshape(m, cskip)
    skip_pad = jnp.zeros((m_pad, c_pad), f32).at[:m, cout:cout + cskip].set(feat2d)

    # VMEM budget derived from the actual block sizes (+2x headroom, v7x-safe).
    blk_bytes = (2 * tm * k_pad * 2 + 2 * k_pad * c_pad * 2
                 + 2 * tm * c_pad * 4 + 2 * tm * c_pad * 4 + 8 * c_pad * 4)
    vmem_limit = int(min(max(2 * blk_bytes, 8 << 20), 64 << 20))

    cost1 = pl.CostEstimate(
        flops=2 * m_pad * k_pad * c_pad, transcendentals=0,
        bytes_accessed=(m_pad * k_pad * 2 + k_pad * c_pad * 2
                        + 2 * m_pad * c_pad * 4))

    # --- Pass 1: conv matmul + concat placement + per-channel sum/sumsq ------
    z2d, psum, psqr = pl.pallas_call(
        conv_concat_stats_kernel,
        out_shape=(jax.ShapeDtypeStruct((m_pad, c_pad), f32),
                   jax.ShapeDtypeStruct((1, c_pad), f32),
                   jax.ShapeDtypeStruct((1, c_pad), f32)),
        grid_spec=pltpu.PrefetchScalarGridSpec(
            num_scalar_prefetch=0,
            grid=(mt,),
            in_specs=[pl.BlockSpec((tm, k_pad), lambda i: (i, 0)),
                      pl.BlockSpec((k_pad, c_pad), lambda i: (0, 0)),
                      pl.BlockSpec((tm, c_pad), lambda i: (i, 0))],
            out_specs=[pl.BlockSpec((tm, c_pad), lambda i: (i, 0)),
                       pl.BlockSpec((1, c_pad), lambda i: (0, 0)),
                       pl.BlockSpec((1, c_pad), lambda i: (0, 0))]),
        compiler_params=pltpu.CompilerParams(
            dimension_semantics=("arbitrary",),        # stats accumulate across M tiles
            vmem_limit_bytes=vmem_limit),
        cost_estimate=cost1,
    )(patches, w2d, skip_pad)

    # --- Fold BN (train-mode batch stats) into one per-channel scale/shift ---
    mean = psum[0] / m
    var = jnp.maximum(psqr[0] / m - mean * mean, 0.0)   # f32 accum; clamp cancellation
    if apply_batchnorm:
        gamma_pad = jnp.zeros((c_pad,), f32).at[:c].set(gamma.astype(f32))
        beta_pad = jnp.zeros((c_pad,), f32).at[:c].set(beta.astype(f32))
        scale = gamma_pad * jax.lax.rsqrt(var + BN_EPS)
        shift = beta_pad - mean * scale                 # conv bias cancels under BN
    else:
        scale = jnp.ones((c_pad,), f32)
        shift = jnp.zeros((c_pad,), f32).at[:cout].set(bias.astype(f32))
    scale = scale.reshape(1, c_pad)
    shift = shift.reshape(1, c_pad)

    # --- Pass 2: y = relu(z * scale + shift), lane-dense, parallel over rows --
    out2d = pl.pallas_call(
        scale_shift_relu_kernel,
        out_shape=jax.ShapeDtypeStruct((m_pad, c_pad), f32),
        grid_spec=pltpu.PrefetchScalarGridSpec(
            num_scalar_prefetch=0,
            grid=(mt,),
            in_specs=[pl.BlockSpec((tm, c_pad), lambda i: (i, 0)),
                      pl.BlockSpec((1, c_pad), lambda i: (0, 0)),
                      pl.BlockSpec((1, c_pad), lambda i: (0, 0))],
            out_specs=pl.BlockSpec((tm, c_pad), lambda i: (i, 0))),
        compiler_params=pltpu.CompilerParams(
            dimension_semantics=("parallel",),
            vmem_limit_bytes=vmem_limit),
    )(z2d, scale, shift)

    # (M, C_pad) -> slice pads -> (N, OH, OW, C) -> NCHW (module output contract).
    return out2d[:m, :c].reshape(n, oh, ow, c).transpose(0, 3, 1, 2)


# ----------------------------------------------------------------------------
# Pure-JAX reference (exact f32 forward of the PyTorch module).
# ----------------------------------------------------------------------------
def decoder_block_ref(x, feat, w_t, bias, gamma, beta, apply_batchnorm=True):
    f32 = jnp.float32
    w_conv = jnp.flip(w_t.astype(f32), axis=(2, 3)).transpose(1, 0, 2, 3)
    y = jax.lax.conv_general_dilated(
        x.astype(f32), w_conv, window_strides=(1, 1),
        padding=((2, 2), (2, 2)), lhs_dilation=(2, 2),
        dimension_numbers=("NCHW", "OIHW", "NCHW"))
    y = y + bias.reshape(1, -1, 1, 1).astype(f32)
    z = jnp.concatenate([y, feat.astype(f32)], axis=1)
    if apply_batchnorm:
        mean = jnp.mean(z, axis=(0, 2, 3), keepdims=True)
        var = jnp.mean((z - mean) ** 2, axis=(0, 2, 3), keepdims=True)
        z = (z - mean) * jax.lax.rsqrt(var + BN_EPS)
        z = z * gamma.reshape(1, -1, 1, 1) + beta.reshape(1, -1, 1, 1)
    return jnp.maximum(z, 0.0)


if __name__ == "__main__":
    key = jax.random.PRNGKey(0)
    k1, k2, k3, k4, k5, k6 = jax.random.split(key, 6)

    # Small shapes consistent with the module: in_ch=4, out_ch=8, skip_ch=4.
    N, Cin, Hin, Win = 2, 4, 8, 8
    Cout, Cskip, KH, KW = 8, 4, 4, 4

    x = jax.random.normal(k1, (N, Cin, Hin, Win), dtype=jnp.float32)
    feat = jax.random.normal(k2, (N, Cskip, 2 * Hin, 2 * Win), dtype=jnp.float32)

    fan = Cin * KH * KW
    w_t = jax.random.normal(k3, (Cin, Cout, KH, KW), dtype=jnp.float32) / jnp.sqrt(fan)
    bias = jax.random.normal(k4, (Cout,), dtype=jnp.float32) * 0.1
    gamma = 1.0 + 0.1 * jax.random.normal(k5, (Cout + Cskip,), dtype=jnp.float32)
    beta = 0.1 * jax.random.normal(k6, (Cout + Cskip,), dtype=jnp.float32)

    out = decoder_block(x, feat, w_t, bias, gamma, beta, apply_batchnorm=True)
    out = jax.block_until_ready(out)

    ref = jax.block_until_ready(
        decoder_block_ref(x, feat, w_t, bias, gamma, beta, apply_batchnorm=True))

    assert out.shape == (N, Cout + Cskip, 2 * Hin, 2 * Win), out.shape
    max_err = float(jnp.max(jnp.abs(out - ref)))
    # bf16 MXU inputs (f32 accumulation) -> tolerance loosened accordingly.
    assert jnp.allclose(out, ref, atol=5e-2, rtol=5e-2), max_err

    print("KERNEL_OK")
</pallas_src>

<mosaic_0001>
module attributes {stable_mosaic.version = 11 : i64} {
  func.func @scale_shift_relu_kernel(%arg0: i32, %arg1: memref<256x128xf32, #tpu.memory_space<vmem>>, %arg2: memref<1x128xf32, #tpu.memory_space<vmem>>, %arg3: memref<1x128xf32, #tpu.memory_space<vmem>>, %arg4: memref<256x128xf32, #tpu.memory_space<vmem>>) attributes {dimension_semantics = [#tpu.dimension_semantics<parallel>], iteration_bounds = array<i64: 2>, scalar_prefetch = 0 : i64, scratch_operands = 0 : i64, tpu.core_type = #tpu.core_type<tc>, window_params = [{transform_indices = @transform_0, window_bounds = array<i64: 256, 128>}, {pipeline_mode = #tpu.pipeline_mode<synchronous>, transform_indices = @transform_1, window_bounds = array<i64: 1, 128>}, {pipeline_mode = #tpu.pipeline_mode<synchronous>, transform_indices = @transform_2, window_bounds = array<i64: 1, 128>}, {transform_indices = @transform_3, window_bounds = array<i64: 256, 128>}]} {
    %c0 = arith.constant 0 : index
    %c0_0 = arith.constant 0 : index
    %0 = vector.load %arg1[%c0, %c0_0] : memref<256x128xf32, #tpu.memory_space<vmem>>, vector<256x128xf32>
    %c0_1 = arith.constant 0 : index
    %c0_2 = arith.constant 0 : index
    %1 = vector.load %arg2[%c0_1, %c0_2] : memref<1x128xf32, #tpu.memory_space<vmem>>, vector<1x128xf32>
    %2 = vector.broadcast %1 : vector<1x128xf32> to vector<256x128xf32>
    %3 = arith.mulf %0, %2 : vector<256x128xf32>
    %c0_3 = arith.constant 0 : index
    %c0_4 = arith.constant 0 : index
    %4 = vector.load %arg3[%c0_3, %c0_4] : memref<1x128xf32, #tpu.memory_space<vmem>>, vector<1x128xf32>
    %5 = vector.broadcast %4 : vector<1x128xf32> to vector<256x128xf32>
    %6 = arith.addf %3, %5 : vector<256x128xf32>
    %cst = arith.constant 0.000000e+00 : f32
    %7 = vector.broadcast %cst : f32 to vector<256x128xf32>
    %8 = arith.maximumf %6, %7 : vector<256x128xf32>
    %c0_5 = arith.constant 0 : index
    %c0_6 = arith.constant 0 : index
    %9 = vector.load %arg4[%c0_5, %c0_6] : memref<256x128xf32, #tpu.memory_space<vmem>>, vector<256x128xf32>
    tpu.vector_store %arg4[%c0_5, %c0_6], %8 {strides = array<i32>} : memref<256x128xf32, #tpu.memory_space<vmem>>, vector<256x128xf32>,
    return
  }
  func.func @transform_0(%arg0: i32) -> (i32, i32) {
    %c0_i32 = arith.constant 0 : i32
    %c0_i32_0 = arith.constant 0 : i32
    return %arg0, %c0_i32 : i32, i32
  }
  func.func @transform_1(%arg0: i32) -> (i32, i32) {
    %c0_i32 = arith.constant 0 : i32
    %c0_i32_0 = arith.constant 0 : i32
    %c0_i32_1 = arith.constant 0 : i32
    return %c0_i32, %c0_i32_0 : i32, i32
  }
  func.func @transform_2(%arg0: i32) -> (i32, i32) {
    %c0_i32 = arith.constant 0 : i32
    %c0_i32_0 = arith.constant 0 : i32
    %c0_i32_1 = arith.constant 0 : i32
    return %c0_i32, %c0_i32_0 : i32, i32
  }
  func.func @transform_3(%arg0: i32) -> (i32, i32) {
    %c0_i32 = arith.constant 0 : i32
    %c0_i32_0 = arith.constant 0 : i32
    return %arg0, %c0_i32 : i32, i32
  }
}

module attributes {stable_mosaic.version = 11 : i64} {
  func.func @conv_concat_stats_kernel(%arg0: i32, %arg1: memref<256x128xbf16, #tpu.memory_space<vmem>>, %arg2: memref<128x128xbf16, #tpu.memory_space<vmem>>, %arg3: memref<256x128xf32, #tpu.memory_space<vmem>>, %arg4: memref<256x128xf32, #tpu.memory_space<vmem>>, %arg5: memref<1x128xf32, #tpu.memory_space<vmem>>, %arg6: memref<1x128xf32, #tpu.memory_space<vmem>>) attributes {dimension_semantics = [#tpu.dimension_semantics<arbitrary>], iteration_bounds = array<i64: 2>, scalar_prefetch = 0 : i64, scratch_operands = 0 : i64, tpu.core_type = #tpu.core_type<tc>, window_params = [{transform_indices = @transform_0, window_bounds = array<i64: 256, 128>}, {pipeline_mode = #tpu.pipeline_mode<synchronous>, transform_indices = @transform_1, window_bounds = array<i64: 128, 128>}, {transform_indices = @transform_2, window_bounds = array<i64: 256, 128>}, {transform_indices = @transform_3, window_bounds = array<i64: 256, 128>}, {pipeline_mode = #tpu.pipeline_mode<synchronous>, transform_indices = @transform_4, window_bounds = array<i64: 1, 128>}, {pipeline_mode = #tpu.pipeline_mode<synchronous>, transform_indices = @transform_5, window_bounds = array<i64: 1, 128>}]} {
    %c0_i32 = arith.constant 0 : i32
    %0 = arith.cmpi eq, %arg0, %c0_i32 : i32
    %1 = arith.extui %0 : i1 to i32
    %c0_i32_0 = arith.constant 0 : i32
    %2 = arith.cmpi ne, %1, %c0_i32_0 : i32
    scf.if %2 {
      %cst_18 = arith.constant 0.000000e+00 : f32
      %20 = vector.broadcast %cst_18 : f32 to vector<1x128xf32>
      %c0_19 = arith.constant 0 : index
      %c0_20 = arith.constant 0 : index
      %21 = vector.load %arg5[%c0_19, %c0_20] : memref<1x128xf32, #tpu.memory_space<vmem>>, vector<1x128xf32>
      tpu.vector_store %arg5[%c0_19, %c0_20], %20 {strides = array<i32>} : memref<1x128xf32, #tpu.memory_space<vmem>>, vector<1x128xf32>,
      %cst_21 = arith.constant 0.000000e+00 : f32
      %22 = vector.broadcast %cst_21 : f32 to vector<1x128xf32>
      %c0_22 = arith.constant 0 : index
      %c0_23 = arith.constant 0 : index
      %23 = vector.load %arg6[%c0_22, %c0_23] : memref<1x128xf32, #tpu.memory_space<vmem>>, vector<1x128xf32>
      tpu.vector_store %arg6[%c0_22, %c0_23], %22 {strides = array<i32>} : memref<1x128xf32, #tpu.memory_space<vmem>>, vector<1x128xf32>,
    } else {
    }
    %c0 = arith.constant 0 : index
    %c0_1 = arith.constant 0 : index
    %3 = vector.load %arg1[%c0, %c0_1] : memref<256x128xbf16, #tpu.memory_space<vmem>>, vector<256x128xbf16>
    %c0_2 = arith.constant 0 : index
    %c0_3 = arith.constant 0 : index
    %4 = vector.load %arg2[%c0_2, %c0_3] : memref<128x128xbf16, #tpu.memory_space<vmem>>, vector<128x128xbf16>
    %cst = arith.constant dense<0.000000e+00> : vector<256x128xf32>
    %5 = tpu.matmul %3, %4, %cst {dimension_numbers = #tpu.dot_dimension_numbers<[1], [0], [0], [1], [0, 0, 1, 1], [], []>} : vector<256x128xbf16>, vector<128x128xbf16>, vector<256x128xf32> -> vector<256x128xf32>
    %c0_4 = arith.constant 0 : index
    %c0_5 = arith.constant 0 : index
    %6 = vector.load %arg3[%c0_4, %c0_5] : memref<256x128xf32, #tpu.memory_space<vmem>>, vector<256x128xf32>
    %7 = arith.addf %5, %6 : vector<256x128xf32>
    %c0_6 = arith.constant 0 : index
    %c0_7 = arith.constant 0 : index
    %8 = vector.load %arg4[%c0_6, %c0_7] : memref<256x128xf32, #tpu.memory_space<vmem>>, vector<256x128xf32>
    tpu.vector_store %arg4[%c0_6, %c0_7], %7 {strides = array<i32>} : memref<256x128xf32, #tpu.memory_space<vmem>>, vector<256x128xf32>,
    %c0_8 = arith.constant 0 : index
    %c0_9 = arith.constant 0 : index
    %9 = vector.load %arg5[%c0_8, %c0_9] : memref<1x128xf32, #tpu.memory_space<vmem>>, vector<1x128xf32>
    %cst_10 = arith.constant dense<0.000000e+00> : vector<128xf32>
    %10 = vector.multi_reduction <add>, %7, %cst_10 [0] : vector<256x128xf32> to vector<128xf32>
    %11 = vector.shape_cast %10 : vector<128xf32> to vector<1x128xf32>
    %12 = arith.addf %9, %11 : vector<1x128xf32>
    %c0_11 = arith.constant 0 : index
    %c0_12 = arith.constant 0 : index
    %13 = vector.load %arg5[%c0_11, %c0_12] : memref<1x128xf32, #tpu.memory_space<vmem>>, vector<1x128xf32>
    tpu.vector_store %arg5[%c0_11, %c0_12], %12 {strides = array<i32>} : memref<1x128xf32, #tpu.memory_space<vmem>>, vector<1x128xf32>,
    %c0_13 = arith.constant 0 : index
    %c0_14 = arith.constant 0 : index
    %14 = vector.load %arg6[%c0_13, %c0_14] : memref<1x128xf32, #tpu.memory_space<vmem>>, vector<1x128xf32>
    %15 = arith.mulf %7, %7 : vector<256x128xf32>
    %cst_15 = arith.constant dense<0.000000e+00> : vector<128xf32>
    %16 = vector.multi_reduction <add>, %15, %cst_15 [0] : vector<256x128xf32> to vector<128xf32>
    %17 = vector.shape_cast %16 : vector<128xf32> to vector<1x128xf32>
    %18 = arith.addf %14, %17 : vector<1x128xf32>
    %c0_16 = arith.constant 0 : index
    %c0_17 = arith.constant 0 : index
    %19 = vector.load %arg6[%c0_16, %c0_17] : memref<1x128xf32, #tpu.memory_space<vmem>>, vector<1x128xf32>
    tpu.vector_store %arg6[%c0_16, %c0_17], %18 {strides = array<i32>} : memref<1x128xf32, #tpu.memory_space<vmem>>, vector<1x128xf32>,
    return
  }
  func.func @transform_0(%arg0: i32) -> (i32, i32) {
    %c0_i32 = arith.constant 0 : i32
    %c0_i32_0 = arith.constant 0 : i32
    return %arg0, %c0_i32 : i32, i32
  }
  func.func @transform_1(%arg0: i32) -> (i32, i32) {
    %c0_i32 = arith.constant 0 : i32
    %c0_i32_0 = arith.constant 0 : i32
    %c0_i32_1 = arith.constant 0 : i32
    return %c0_i32, %c0_i32_0 : i32, i32
  }
  func.func @transform_2(%arg0: i32) -> (i32, i32) {
    %c0_i32 = arith.constant 0 : i32
    %c0_i32_0 = arith.constant 0 : i32
    return %arg0, %c0_i32 : i32, i32
  }
  func.func @transform_3(%arg0: i32) -> (i32, i32) {
    %c0_i32 = arith.constant 0 : i32
    %c0_i32_0 = arith.constant 0 : i32
    return %arg0, %c0_i32 : i32, i32
  }
  func.func @transform_4(%arg0: i32) -> (i32, i32) {
    %c0_i32 = arith.constant 0 : i32
    %c0_i32_0 = arith.constant 0 : i32
    %c0_i32_1 = arith.constant 0 : i32
    return %c0_i32, %c0_i32_0 : i32, i32
  }
  func.func @transform_5(%arg0: i32) -> (i32, i32) {
    %c0_i32 = arith.constant 0 : i32
    %c0_i32_0 = arith.constant 0 : i32
    %c0_i32_1 = arith.constant 0 : i32
    return %c0_i32, %c0_i32_0 : i32, i32
  }
}

</mosaic_0001>

<bundles_post_ra>
// kernel: decoder_block.3
= control target key start
LH: loop header
LB: loop body
LE: loop exit
PB: predicated region body
PF: predicated region fallthrough
CT: control target
= control target key end

     0   :  { %s453_s12 = smov 0   ;;  %s612_s0 = inlined_call_operand.vmem [shape: f32[512,128], index: 0, kind: input, shape index: {}]   ;;  %s613_s1 = inlined_call_operand.vmem [shape: f32[1,128], index: 1, kind: input, shape index: {}]   ;;  %s614_s2 = inlined_call_operand.vmem [shape: f32[1,128], index: 2, kind: input, shape index: {}]   ;;  %s615_s3 = inlined_call_operand.vmem [shape: f32[512,128], index: 3, kind: output, shape index: {}]  }
   0x1 LB: > { %s404_s13 = sadd.s32 4294967295, %s431_s12   ;;  %p408_p0 = scmp.ge.s32.totalorder %s431_s12, 1  ;;  %s431_s12 = sphi %s453_s12, %s13_s12  }
   0x2   : > { %p138_p1 = scmp.lt.s32.totalorder %s431_s12, 3 }
   0x4   : > { %p139_p2 = pnand %p408_p0, %p138_p1 }
   0x5   : > { %s409_s14 = sshll.u32 (!%p139_p2), %s404_s13, 5  ;;  %v464_v0 = vld [vmem:[%s613_s1] ss:$0 sm:$0xff] (!%p139_p2) }
   0x6   : > { %142 = sbr.rel (%p139_p2) target bundleno = 46 (0x2e), region = 32  ;;  %p163_p3 = scmp.lt.s32.totalorder (!%p139_p2), %s409_s14, 63  ;;  %v474_v1 = vld [vmem:[%s614_s2] ss:$0 sm:$0xff] (!%p139_p2) }
   0xd   : > { %s617_s14 = smov (!%p163_p3, %s409_s14), 63 }
   0xe   : > { %s410_s15 = sshll.u32 %s617_s14, 3 }
   0xf   : > { %s469_s20 = scalar_lea.vmem %s612_s0, %s410_s15  ;;  %s497_s25 = scalar_lea.vmem %s615_s3, %s410_s15 }
  0x10   : > { %v174_v2 = vld [vmem:[%s469_s20] sm:$0xff]  ;;  %v175_v3 = vld [vmem:[%s469_s20 + $0x8] sm:$0xff]  ;;  %v176_v4 = vld [vmem:[%s469_s20 + $0x10] sm:$0xff] }
  0x11   : > { %v213_v5 = vmul.f32 %v464_v0, %v174_v2  ;;  %v214_v6 = vmul.f32 %v464_v0, %v175_v3  ;;  %v215_v7 = vmul.f32 %v464_v0, %v176_v4  ;;  %v177_v8 = vld [vmem:[%s469_s20 + $0x18] sm:$0xff]  ;;  %v178_v9 = vld [vmem:[%s469_s20 + $0x20] sm:$0xff]  ;;  %v179_v10 = vld [vmem:[%s469_s20 + $0x28] sm:$0xff] }
  0x12   : > { %v216_v11 = vmul.f32 %v464_v0, %v177_v8  ;;  %v217_v12 = vmul.f32 %v464_v0, %v178_v9  ;;  %v218_v13 = vmul.f32 %v464_v0, %v179_v10  ;;  %v180_v14 = vld [vmem:[%s469_s20 + $0x30] sm:$0xff]  ;;  %v181_v15 = vld [vmem:[%s469_s20 + $0x38] sm:$0xff]  ;;  %v182_v24 = vld [vmem:[%s469_s20 + $0x40] sm:$0xff] }
  0x13   : > { %v252_v16 = vadd.f32 %v474_v1, %v213_v5  ;;  %v253_v17 = vadd.f32 %v474_v1, %v214_v6  ;;  %v254_v18 = vadd.f32 %v474_v1, %v215_v7  ;;  %v219_v19 = vmul.f32 %v464_v0, %v180_v14  ;;  %v183_v25 = vld [vmem:[%s469_s20 + $0x48] sm:$0xff]  ;;  %v184_v26 = vld [vmem:[%s469_s20 + $0x50] sm:$0xff]  ;;  %v185_v31 = vld [vmem:[%s469_s20 + $0x58] sm:$0xff] }
  0x14   : > { %v255_v20 = vadd.f32 %v474_v1, %v216_v11  ;;  %v256_v21 = vadd.f32 %v474_v1, %v217_v12  ;;  %v257_v22 = vadd.f32 %v474_v1, %v218_v13  ;;  %v220_v23 = vmul.f32 %v464_v0, %v181_v15  ;;  %v186_v32 = vld [vmem:[%s469_s20 + $0x60] sm:$0xff]  ;;  %v187_v33 = vld [vmem:[%s469_s20 + $0x68] sm:$0xff]  ;;  %v188_v38 = vld [vmem:[%s469_s20 + $0x70] sm:$0xff] }
  0x15   : > { %v284_v27 = vmax.f32 %v252_v16, 0.0  ;;  %v285_v28 = vmax.f32 %v253_v17, 0.0  ;;  %v286_v29 = vmax.f32 %v254_v18, 0.0  ;;  %v258_v30 = vadd.f32 %v474_v1, %v219_v19  ;;  %v189_v43 = vld [vmem:[%s469_s20 + $0x78] sm:$0xff]  ;;  %v190_v56 = vld [vmem:[%s469_s20 + $0x80] sm:$0xff]  ;;  %v191_v57 = vld [vmem:[%s469_s20 + $0x88] sm:$0xff] }
  0x16   : > { %v287_v34 = vmax.f32 %v255_v20, 0.0  ;;  %v288_v35 = vmax.f32 %v256_v21, 0.0  ;;  %v289_v36 = vmax.f32 %v257_v22, 0.0  ;;  %v259_v37 = vadd.f32 %v474_v1, %v220_v23  ;;  %v192_v58 = vld [vmem:[%s469_s20 + $0x90] sm:$0xff]  ;;  %v193_v63 = vld [vmem:[%s469_s20 + $0x98] sm:$0xff]  ;;  %v194_v2 = vld [vmem:[%s469_s20 + $0xa0] sm:$0xff] }
  0x17   : > { %316 = vst [vmem:[%s497_s25] sm:$0xff] %v284_v27  ;;  %317 = vst [vmem:[%s497_s25 + $0x8] sm:$0xff] %v285_v28  ;;  %v290_v39 = vmax.f32 %v258_v30, 0.0  ;;  %v221_v40 = vmul.f32 %v464_v0, %v182_v24  ;;  %v222_v41 = vmul.f32 %v464_v0, %v183_v25  ;;  %v223_v42 = vmul.f32 %v464_v0, %v184_v26  ;;  %v195_v3 = vld [vmem:[%s469_s20 + $0xa8] sm:$0xff]  ;;  %v196_v8 = vld [vmem:[%s469_s20 + $0xb0] sm:$0xff] }
  0x18   : > { %318 = vst [vmem:[%s497_s25 + $0x10] sm:$0xff] %v286_v29  ;;  %319 = vst [vmem:[%s497_s25 + $0x18] sm:$0xff] %v287_v34  ;;  %v291_v44 = vmax.f32 %v259_v37, 0.0  ;;  %v224_v45 = vmul.f32 %v464_v0, %v185_v31  ;;  %v225_v46 = vmul.f32 %v464_v0, %v186_v32  ;;  %v226_v47 = vmul.f32 %v464_v0, %v187_v33  ;;  %v197_v13 = vld [vmem:[%s469_s20 + $0xb8] sm:$0xff]  ;;  %v198_v26 = vld [vmem:[%s469_s20 + $0xc0] sm:$0xff] }
  0x19   : > { %320 = vst [vmem:[%s497_s25 + $0x20] sm:$0xff] %v288_v35  ;;  %321 = vst [vmem:[%s497_s25 + $0x28] sm:$0xff] %v289_v36  ;;  %v260_v48 = vadd.f32 %v474_v1, %v221_v40  ;;  %v261_v49 = vadd.f32 %v474_v1, %v222_v41  ;;  %v262_v50 = vadd.f32 %v474_v1, %v223_v42  ;;  %v199_v27 = vld [vmem:[%s469_s20 + $0xc8] sm:$0xff]  ;;  %v200_v28 = vld [vmem:[%s469_s20 + $0xd0] sm:$0xff] }
  0x1a   : > { %322 = vst [vmem:[%s497_s25 + $0x30] sm:$0xff] %v290_v39  ;;  %v227_v51 = vmul.f32 %v464_v0, %v188_v38  ;;  %323 = vst [vmem:[%s497_s25 + $0x38] sm:$0xff] %v291_v44  ;;  %v263_v52 = vadd.f32 %v474_v1, %v224_v45  ;;  %v264_v53 = vadd.f32 %v474_v1, %v225_v46  ;;  %v201_v33 = vld [vmem:[%s469_s20 + $0xd8] sm:$0xff]  ;;  %v202_v34 = vld [vmem:[%s469_s20 + $0xe0] sm:$0xff] }
  0x1b   : > { %v265_v54 = vadd.f32 %v474_v1, %v226_v47  ;;  %v228_v55 = vmul.f32 %v464_v0, %v189_v43  ;;  %v292_v59 = vmax.f32 %v260_v48, 0.0  ;;  %v293_v60 = vmax.f32 %v261_v49, 0.0  ;;  %v203_v35 = vld [vmem:[%s469_s20 + $0xe8] sm:$0xff]  ;;  %v204_v40 = vld [vmem:[%s469_s20 + $0xf0] sm:$0xff]  ;;  %v205_v45 = vld [vmem:[%s469_s20 + $0xf8] sm:$0xff] }
  0x1c   : > { %v294_v61 = vmax.f32 %v262_v50, 0.0  ;;  %v266_v62 = vadd.f32 %v474_v1, %v227_v51  ;;  %v295_v4 = vmax.f32 %v263_v52, 0.0  ;;  %v296_v5 = vmax.f32 %v264_v53, 0.0 }
  0x1d   : > { %v297_v6 = vmax.f32 %v265_v54, 0.0  ;;  %v267_v7 = vadd.f32 %v474_v1, %v228_v55  ;;  %324 = vst [vmem:[%s497_s25 + $0x40] sm:$0xff] %v292_v59  ;;  %325 = vst [vmem:[%s497_s25 + $0x48] sm:$0xff] %v293_v60  ;;  %v229_v10 = vmul.f32 %v464_v0, %v190_v56  ;;  %v230_v11 = vmul.f32 %v464_v0, %v191_v57 }
  0x1e   : > { %326 = vst [vmem:[%s497_s25 + $0x50] sm:$0xff] %v294_v61  ;;  %v298_v9 = vmax.f32 %v266_v62, 0.0  ;;  %v231_v12 = vmul.f32 %v464_v0, %v192_v58  ;;  %327 = vst [vmem:[%s497_s25 + $0x58] sm:$0xff] %v295_v4  ;;  %v232_v15 = vmul.f32 %v464_v0, %v193_v63  ;;  %v233_v16 = vmul.f32 %v464_v0, %v194_v2 }
  0x1f   : > { %328 = vst [vmem:[%s497_s25 + $0x60] sm:$0xff] %v296_v5  ;;  %329 = vst [vmem:[%s497_s25 + $0x68] sm:$0xff] %v297_v6  ;;  %v299_v14 = vmax.f32 %v267_v7, 0.0  ;;  %v234_v17 = vmul.f32 %v464_v0, %v195_v3  ;;  %v268_v18 = vadd.f32 %v474_v1, %v229_v10  ;;  %v269_v19 = vadd.f32 %v474_v1, %v230_v11 }
  0x20   : > { %330 = vst [vmem:[%s497_s25 + $0x70] sm:$0xff] %v298_v9  ;;  %v270_v20 = vadd.f32 %v474_v1, %v231_v12  ;;  %v235_v21 = vmul.f32 %v464_v0, %v196_v8  ;;  %v271_v22 = vadd.f32 %v474_v1, %v232_v15  ;;  %v272_v23 = vadd.f32 %v474_v1, %v233_v16 }
  0x21   : > { %331 = vst [vmem:[%s497_s25 + $0x78] sm:$0xff] %v299_v14  ;;  %v273_v24 = vadd.f32 %v474_v1, %v234_v17  ;;  %v236_v25 = vmul.f32 %v464_v0, %v197_v13  ;;  %v300_v29 = vmax.f32 %v268_v18, 0.0  ;;  %v301_v30 = vmax.f32 %v269_v19, 0.0 }
  0x22   : > { %v302_v31 = vmax.f32 %v270_v20, 0.0  ;;  %v274_v32 = vadd.f32 %v474_v1, %v235_v21  ;;  %v303_v36 = vmax.f32 %v271_v22, 0.0  ;;  %v304_v37 = vmax.f32 %v272_v23, 0.0 }
  0x23   : > { %v305_v38 = vmax.f32 %v273_v24, 0.0  ;;  %v275_v39 = vadd.f32 %v474_v1, %v236_v25  ;;  %332 = vst [vmem:[%s497_s25 + $0x80] sm:$0xff] %v300_v29  ;;  %333 = vst [vmem:[%s497_s25 + $0x88] sm:$0xff] %v301_v30  ;;  %v237_v42 = vmul.f32 %v464_v0, %v198_v26  ;;  %v238_v43 = vmul.f32 %v464_v0, %v199_v27 }
  0x24   : > { %334 = vst [vmem:[%s497_s25 + $0x90] sm:$0xff] %v302_v31  ;;  %v306_v41 = vmax.f32 %v274_v32, 0.0  ;;  %v239_v44 = vmul.f32 %v464_v0, %v200_v28  ;;  %335 = vst [vmem:[%s497_s25 + $0x98] sm:$0xff] %v303_v36  ;;  %v240_v47 = vmul.f32 %v464_v0, %v201_v33  ;;  %v241_v48 = vmul.f32 %v464_v0, %v202_v34 }
  0x25   : > { %336 = vst [vmem:[%s497_s25 + $0xa0] sm:$0xff] %v304_v37  ;;  %337 = vst [vmem:[%s497_s25 + $0xa8] sm:$0xff] %v305_v38  ;;  %v307_v46 = vmax.f32 %v275_v39, 0.0  ;;  %v242_v49 = vmul.f32 %v464_v0, %v203_v35  ;;  %v276_v50 = vadd.f32 %v474_v1, %v237_v42  ;;  %v277_v51 = vadd.f32 %v474_v1, %v238_v43 }
  0x26   : > { %338 = vst [vmem:[%s497_s25 + $0xb0] sm:$0xff] %v306_v41  ;;  %v278_v52 = vadd.f32 %v474_v1, %v239_v44  ;;  %v243_v53 = vmul.f32 %v464_v0, %v204_v40  ;;  %v279_v54 = vadd.f32 %v474_v1, %v240_v47  ;;  %v280_v55 = vadd.f32 %v474_v1, %v241_v48 }
  0x27   : > { %339 = vst [vmem:[%s497_s25 + $0xb8] sm:$0xff] %v307_v46  ;;  %v281_v56 = vadd.f32 %v474_v1, %v242_v49  ;;  %v244_v57 = vmul.f32 %v464_v0, %v205_v45  ;;  %v308_v58 = vmax.f32 %v276_v50, 0.0  ;;  %v309_v59 = vmax.f32 %v277_v51, 0.0 }
  0x28   : > { %v310_v60 = vmax.f32 %v278_v52, 0.0  ;;  %v282_v61 = vadd.f32 %v474_v1, %v243_v53  ;;  %v311_v62 = vmax.f32 %v279_v54, 0.0  ;;  %v312_v63 = vmax.f32 %v280_v55, 0.0 }
  0x29   : > { %v313_v2 = vmax.f32 %v281_v56, 0.0  ;;  %v283_v3 = vadd.f32 %v474_v1, %v244_v57  ;;  %340 = vst [vmem:[%s497_s25 + $0xc0] sm:$0xff] %v308_v58  ;;  %341 = vst [vmem:[%s497_s25 + $0xc8] sm:$0xff] %v309_v59 }
  0x2a   : > { %342 = vst [vmem:[%s497_s25 + $0xd0] sm:$0xff] %v310_v60  ;;  %v314_v4 = vmax.f32 %v282_v61, 0.0  ;;  %343 = vst [vmem:[%s497_s25 + $0xd8] sm:$0xff] %v311_v62 }
  0x2b   : > { %344 = vst [vmem:[%s497_s25 + $0xe0] sm:$0xff] %v312_v63  ;;  %345 = vst [vmem:[%s497_s25 + $0xe8] sm:$0xff] %v313_v2  ;;  %v315_v0 = vmax.f32 %v283_v3, 0.0 }
  0x2c   : > { %346 = vst [vmem:[%s497_s25 + $0xf0] sm:$0xff] %v314_v4 }
  0x2d   : > { %347 = vst [vmem:[%s497_s25 + $0xf8] sm:$0xff] %v315_v0 }
  0x2e PF: > { %s13_s12 = sadd.s32 1, %s431_s12  }
  0x2f   : > { %p10_p4 = scmp.ge.s32.totalorder %s13_s12, 4  }
  0x31   :  { %12 = sbr.rel (!%p10_p4) target bundleno = 1 (0x1), region = 62 }

// kernel: decoder_block.2
= control target key start
LH: loop header
LB: loop body
LE: loop exit
PB: predicated region body
PF: predicated region fallthrough
CT: control target
= control target key end

     0   :  { %s1059_s18 = smov 0   ;;  %s1297_s0 = inlined_call_operand.vmem [shape: bf16[512,128], index: 0, kind: input, shape index: {}]   ;;  %s1298_s1 = inlined_call_operand.vmem [shape: bf16[128,128], index: 1, kind: input, shape index: {}]   ;;  %s1299_s2 = inlined_call_operand.vmem [shape: f32[512,128], index: 2, kind: input, shape index: {}]   ;;  %s1300_s3 = inlined_call_operand.vmem [shape: f32[512,128], index: 3, kind: output, shape index: {0}]   ;;  %s1301_s4 = inlined_call_operand.vmem [shape: f32[1,128], index: 4, kind: output, shape index: {1}]   ;;  %s1302_s5 = inlined_call_operand.vmem [shape: f32[1,128], index: 5, kind: output, shape index: {2}]  }
   0x1 LB: > { %s861_s19 = sadd.s32 4294967295, %s1026_s18   ;;  %p865_p0 = scmp.ge.s32.totalorder %s1026_s18, 1  ;;  %s1026_s18 = sphi %s1059_s18, %s16_s18  }
   0x2   : > { %p194_p1 = scmp.lt.s32.totalorder %s1026_s18, 3 }
   0x4   : > { %p195_p2 = pnand %p865_p0, %p194_p1 }
   0x5   : > { %s866_s20 = sshll.u32 (!%p195_p2), %s861_s19, 5  ;;  %p872_p4 = scmp.ne.s32.totalorder (!%p195_p2), %s861_s19, 0 }
   0x6   : > { %198 = sbr.rel (%p195_p2) target bundleno = 349 (0x15d), region = 32  ;;  %p228_p3 = scmp.lt.s32.totalorder (!%p195_p2), %s866_s20, 63 }
   0xd   : > { %s1304_s20 = smov (!%p228_p3, %s866_s20), 63  ;;  %249 = sbr.rel (%p872_p4) target bundleno = 20 (0x14), region = 36 }
   0xe   : > { %s867_s21 = sshll.u32 %s1304_s20, 2  ;;  %s869_s22 = sshll.u32 %s1304_s20, 3  ;;  %v1028_v0 = vmov (!%p872_p4), 0.0  }
   0xf   : > { %s1070_s25 = scalar_lea.vmem %s1297_s0, %s867_s21  ;;  %s1075_s28 = scalar_lea.vmem %s1299_s2, %s869_s22  ;;  %250 = vst [vmem:[%s1301_s4] sm:$0x1] (!%p872_p4), %v1028_v0  ;;  %251 = vst [vmem:[%s1302_s5] sm:$0x1] (!%p872_p4), %v1028_v0 }
  0x10   : > { %s1080_s6 = scalar_lea.vmem %s1300_s3, %s869_s22 }
  0x14 PF: > { %v996_v1 = vld [vmem:[%s1298_s1] sm:$0xff]   ;;  %v997_v2 = vld [vmem:[%s1298_s1 + $0x8] sm:$0xff]   ;;  %v998_v3 = vld [vmem:[%s1298_s1 + $0x10] sm:$0xff]  }
  0x15   : > { %923 = vmatprep.subr.bf16.mxu0 %v996_v1  ;;  %971 = vmatprep.subr.bf16.mxu1 %v996_v1  ;;  %v999_v4 = vld [vmem:[%s1298_s1 + $0x18] sm:$0xff]   ;;  %v1004_v5 = vld [vmem:[%s1070_s25] sm:$0xff]   ;;  %v1001_v7 = vld [vmem:[%s1298_s1 + $0x28] sm:$0xff]  }
  0x16   : > { %924 = vmatpush3.bf16.msra.mxu0 %v996_v1  ;;  %979 = vmatpush3.bf16.msra.mxu1 %v996_v1  ;;  %v1000_v6 = vld [vmem:[%s1298_s1 + $0x20] sm:$0xff]   ;;  %v1002_v9 = vld [vmem:[%s1298_s1 + $0x30] sm:$0xff]   ;;  %v1003_v10 = vld [vmem:[%s1298_s1 + $0x38] sm:$0xff]  }
  0x17   : > { %925 = vmatprep.subr.bf16.mxu0 %v997_v2  ;;  %972 = vmatprep.subr.bf16.mxu1 %v997_v2  ;;  %v1012_v8 = vld [vmem:[%s1070_s25 + $0x40] sm:$0xff]   ;;  %v1005_v11 = vld [vmem:[%s1070_s25 + $0x8] sm:$0xff]   ;;  %v1006_v13 = vld [vmem:[%s1070_s25 + $0x10] sm:$0xff]  }
  0x18   : > { %939 = vmatprep.mubr.bf16.mxu0 %v1004_v5  ;;  %955 = vmatprep.mubr.bf16.mxu1 %v1012_v8  ;;  %v1013_v12 = vld [vmem:[%s1070_s25 + $0x48] sm:$0xff]   ;;  %v1014_v14 = vld [vmem:[%s1070_s25 + $0x50] sm:$0xff]   ;;  %v1007_v15 = vld [vmem:[%s1070_s25 + $0x18] sm:$0xff]  }
  0x19   : > { %v1015_v16 = vld [vmem:[%s1070_s25 + $0x58] sm:$0xff]   ;;  %v1008_v17 = vld [vmem:[%s1070_s25 + $0x20] sm:$0xff]   ;;  %v1009_v19 = vld [vmem:[%s1070_s25 + $0x28] sm:$0xff]  }
  0x1a   : > { %926 = vmatpush3.bf16.msra.mxu0 %v997_v2  ;;  %980 = vmatpush3.bf16.msra.mxu1 %v997_v2  ;;  %v1016_v18 = vld [vmem:[%s1070_s25 + $0x60] sm:$0xff]   ;;  %v1017_v20 = vld [vmem:[%s1070_s25 + $0x68] sm:$0xff]   ;;  %v1010_v21 = vld [vmem:[%s1070_s25 + $0x30] sm:$0xff]  }
  0x1b   : > { %927 = vmatprep.subr.bf16.mxu0 %v998_v3  ;;  %973 = vmatprep.subr.bf16.mxu1 %v998_v3  ;;  %v1018_v22 = vld [vmem:[%s1070_s25 + $0x70] sm:$0xff]   ;;  %v1011_v23 = vld [vmem:[%s1070_s25 + $0x38] sm:$0xff]   ;;  %v300_v27 = vld [vmem:[%s1075_s28] sm:$0xff] }
  0x1c   : > { %v1019_v24 = vld [vmem:[%s1070_s25 + $0x78] sm:$0xff]   ;;  %v302_v25 = vld [vmem:[%s1075_s28 + $0x10] sm:$0xff]  ;;  %v316_v28 = vld [vmem:[%s1075_s28 + $0x80] sm:$0xff] }
  0x1d   : > { %v318_v26 = vld [vmem:[%s1075_s28 + $0x90] sm:$0xff]  ;;  %v303_v30 = vld [vmem:[%s1075_s28 + $0x18] sm:$0xff]  ;;  %v301_v35 = vld [vmem:[%s1075_s28 + $0x8] sm:$0xff] }
  0x1e   : > { %928 = vmatpush3.bf16.msra.mxu0 %v998_v3  ;;  %981 = vmatpush3.bf16.msra.mxu1 %v998_v3  ;;  %v319_v32 = vld [vmem:[%s1075_s28 + $0x98] sm:$0xff]  ;;  %v317_v38 = vld [vmem:[%s1075_s28 + $0x88] sm:$0xff]  ;;  %v306_v52 = vld [vmem:[%s1075_s28 + $0x30] sm:$0xff] }
  0x1f   : > { %929 = vmatprep.subr.bf16.mxu0 %v999_v4  ;;  %974 = vmatprep.subr.bf16.mxu1 %v999_v4  ;;  %v322_v53 = vld [vmem:[%s1075_s28 + $0xb0] sm:$0xff]  ;;  %v304_v54 = vld [vmem:[%s1075_s28 + $0x20] sm:$0xff]  ;;  %v307_v60 = vld [vmem:[%s1075_s28 + $0x38] sm:$0xff] }
  0x20   : > { %v320_v55 = vld [vmem:[%s1075_s28 + $0xa0] sm:$0xff]  ;;  %v323_v62 = vld [vmem:[%s1075_s28 + $0xb8] sm:$0xff]  ;;  %v305_v2 = vld [vmem:[%s1075_s28 + $0x28] sm:$0xff] }
  0x22   : > { %930 = vmatpush3.bf16.msra.mxu0 %v999_v4  ;;  %982 = vmatpush3.bf16.msra.mxu1 %v999_v4 }
  0x23   : > { %931 = vmatprep.subr.bf16.mxu0 %v1000_v6  ;;  %975 = vmatprep.subr.bf16.mxu1 %v1000_v6 }
  0x26   : > { %932 = vmatpush3.bf16.msra.mxu0 %v1000_v6  ;;  %983 = vmatpush3.bf16.msra.mxu1 %v1000_v6 }
  0x27   : > { %933 = vmatprep.subr.bf16.mxu0 %v1001_v7  ;;  %976 = vmatprep.subr.bf16.mxu1 %v1001_v7 }
  0x2a   : > { %934 = vmatpush3.bf16.msra.mxu0 %v1001_v7  ;;  %984 = vmatpush3.bf16.msra.mxu1 %v1001_v7 }
  0x2b   : > { %935 = vmatprep.subr.bf16.mxu0 %v1002_v9  ;;  %977 = vmatprep.subr.bf16.mxu1 %v1002_v9 }
  0x2e   : > { %936 = vmatpush3.bf16.msra.mxu0 %v1002_v9  ;;  %985 = vmatpush3.bf16.msra.mxu1 %v1002_v9 }
  0x2f   : > { %937 = vmatprep.subr.bf16.mxu0 %v1003_v10  ;;  %978 = vmatprep.subr.bf16.mxu1 %v1003_v10 }
  0x32   : > { %938 = vmatpush3.bf16.msra.mxu0 %v1003_v10  ;;  %986 = vmatpush3.bf16.msra.mxu1 %v1003_v10 }
  0x35   : > { %940 = vmatmul.mubr.bf16.vlgmr.msra.gmra.mrb[0].mxu0 %v1005_v11  ;;  %956 = vmatmul.mubr.bf16.vlgmr.msra.gmra.mrb[0].mxu1 %v1013_v12  ;;  %v321_v11 = vld [vmem:[%s1075_s28 + $0xa8] sm:$0xff] }
  0x36   : > { %943 = vmatprep.mubr.bf16.mxu0 %v1006_v13  ;;  %959 = vmatprep.mubr.bf16.mxu1 %v1014_v14 }
  0x3d   : > { %944 = vmatmul.mubr.bf16.gmra.mrb[4].mxu0 %v1007_v15  ;;  %960 = vmatmul.mubr.bf16.gmra.mrb[4].mxu1 %v1015_v16 }
  0x3e   : > { %947 = vmatprep.mubr.bf16.mxu0 %v1008_v17  ;;  %963 = vmatprep.mubr.bf16.mxu1 %v1016_v18 }
  0x45   : > { %948 = vmatmul.mubr.bf16.gmra.mrb[8].mxu0 %v1009_v19  ;;  %964 = vmatmul.mubr.bf16.gmra.mrb[8].mxu1 %v1017_v20 }
  0x46   : > { %951 = vmatprep.mubr.bf16.mxu0 %v1010_v21  ;;  %967 = vmatprep.mubr.bf16.mxu1 %v1018_v22 }
  0x4d   : > { %952 = vmatmul.mubr.bf16.gmra.mrb[12].mxu0 %v1011_v23  ;;  %968 = vmatmul.mubr.bf16.gmra.mrb[12].mxu1 %v1019_v24  ;;  %v310_v24 = vld [vmem:[%s1075_s28 + $0x50] sm:$0xff] }
 0x108   : > { %v941_v29 = vpop.f32.mrb[0].mxu0  ;;  %v957_v31 = vpop.f32.mrb[0].mxu1 }
 0x109   : > { %v519_v33 = vadd.f32 %v941_v29, %v302_v25  ;;  %v510_v34 = vpop.f32.mrb[1].mxu0  ;;  %v1135_v36 = vadd.f32 %v957_v31, %v318_v26  ;;  %v574_v37 = vpop.f32.mrb[1].mxu1  ;;  %v326_v25 = vld [vmem:[%s1075_s28 + $0xd0] sm:$0xff]  ;;  %v308_v26 = vld [vmem:[%s1075_s28 + $0x40] sm:$0xff] }
 0x10a   : > { %v511_v39 = vadd.f32 %v510_v34, %v300_v27  ;;  %v942_v40 = vpop.f32.mrb[2].mxu0  ;;  %v1138_v41 = vadd.f32 %v574_v37, %v316_v28  ;;  %v958_v42 = vpop.f32.mrb[2].mxu1  ;;  %v324_v27 = vld [vmem:[%s1075_s28 + $0xc0] sm:$0xff]  ;;  %v327_v34 = vld [vmem:[%s1075_s28 + $0xd8] sm:$0xff] }
 0x10b   : > { %639 = vst [vmem:[%s1080_s6 + $0x10] sm:$0xff] %v519_v33  ;;  %v522_v43 = vadd.f32 %v942_v40, %v303_v30  ;;  %v513_v44 = vpop.f32.mrb[3].mxu0  ;;  %655 = vst [vmem:[%s1080_s6 + $0x90] sm:$0xff] %v1135_v36  ;;  %v1143_v45 = vadd.f32 %v958_v42, %v319_v32  ;;  %v577_v46 = vpop.f32.mrb[3].mxu1  ;;  %v712_v56 = vmul.f32 %v519_v33, %v519_v33  ;;  %v311_v32 = vld [vmem:[%s1075_s28 + $0x58] sm:$0xff] }
 0x10c   : > { %637 = vst [vmem:[%s1080_s6] sm:$0xff] %v511_v39  ;;  %v514_v47 = vadd.f32 %v513_v44, %v301_v35  ;;  %653 = vst [vmem:[%s1080_s6 + $0x80] sm:$0xff] %v1138_v41  ;;  %v1148_v48 = vadd.f32 %v577_v46, %v317_v38  ;;  %v710_v49 = vmul.f32 %v511_v39, %v511_v39 }
 0x10d   : > { %640 = vst [vmem:[%s1080_s6 + $0x18] sm:$0xff] %v522_v43  ;;  %656 = vst [vmem:[%s1080_s6 + $0x98] sm:$0xff] %v1143_v45  ;;  %v713_v63 = vmul.f32 %v522_v43, %v522_v43 }
 0x10e   : > { %638 = vst [vmem:[%s1080_s6 + $0x8] sm:$0xff] %v514_v47  ;;  %v670_v50 = vadd.f32 %v514_v47, %v511_v39  ;;  %v711_v51 = vmul.f32 %v514_v47, %v514_v47  ;;  %654 = vst [vmem:[%s1080_s6 + $0x88] sm:$0xff] %v1148_v48  ;;  %v309_v39 = vld [vmem:[%s1075_s28 + $0x48] sm:$0xff] }
 0x110   : > { %v671_v57 = vadd.f32 %v670_v50, %v519_v33  ;;  %v742_v58 = vadd.f32 %v711_v51, %v710_v49  ;;  %v945_v59 = vpop.f32.mrb[4].mxu0  ;;  %v961_v61 = vpop.f32.mrb[4].mxu1  ;;  %v325_v51 = vld [vmem:[%s1075_s28 + $0xc8] sm:$0xff] }
 0x111   : > { %v535_v0 = vadd.f32 %v945_v59, %v306_v52  ;;  %v526_v1 = vpop.f32.mrb[5].mxu0  ;;  %v1163_v3 = vadd.f32 %v961_v61, %v322_v53  ;;  %v590_v4 = vpop.f32.mrb[5].mxu1 }
 0x112   : > { %v743_v5 = vadd.f32 %v742_v58, %v712_v56  ;;  %v527_v6 = vadd.f32 %v526_v1, %v304_v54  ;;  %v672_v7 = vadd.f32 %v671_v57, %v522_v43  ;;  %v946_v8 = vpop.f32.mrb[6].mxu0  ;;  %v1165_v9 = vadd.f32 %v590_v4, %v320_v55  ;;  %v962_v10 = vpop.f32.mrb[6].mxu1  ;;  %v330_v1 = vld [vmem:[%s1075_s28 + $0xf0] sm:$0xff]  ;;  %v328_v4 = vld [vmem:[%s1075_s28 + $0xe0] sm:$0xff] }
 0x113   : > { %643 = vst [vmem:[%s1080_s6 + $0x30] sm:$0xff] %v535_v0  ;;  %v538_v12 = vadd.f32 %v946_v8, %v307_v60  ;;  %v529_v13 = vpop.f32.mrb[7].mxu0  ;;  %659 = vst [vmem:[%s1080_s6 + $0xb0] sm:$0xff] %v1163_v3  ;;  %v1171_v14 = vadd.f32 %v962_v10, %v323_v62  ;;  %v593_v15 = vpop.f32.mrb[7].mxu1  ;;  %v716_v28 = vmul.f32 %v535_v0, %v535_v0  ;;  %v315_v10 = vld [vmem:[%s1075_s28 + $0x78] sm:$0xff] }
 0x114   : > { %641 = vst [vmem:[%s1080_s6 + $0x20] sm:$0xff] %v527_v6  ;;  %v673_v16 = vadd.f32 %v672_v7, %v527_v6  ;;  %v714_v17 = vmul.f32 %v527_v6, %v527_v6  ;;  %v744_v18 = vadd.f32 %v743_v5, %v713_v63  ;;  %v530_v19 = vadd.f32 %v529_v13, %v305_v2  ;;  %v312_v2 = vld [vmem:[%s1075_s28 + $0x60] sm:$0xff] }
 0x115   : > { %657 = vst [vmem:[%s1080_s6 + $0xa0] sm:$0xff] %v1165_v9  ;;  %644 = vst [vmem:[%s1080_s6 + $0x38] sm:$0xff] %v538_v12  ;;  %v1179_v20 = vadd.f32 %v593_v15, %v321_v11  ;;  %v717_v35 = vmul.f32 %v538_v12, %v538_v12 }
 0x116   : > { %660 = vst [vmem:[%s1080_s6 + $0xb8] sm:$0xff] %v1171_v14  ;;  %v745_v21 = vadd.f32 %v744_v18, %v714_v17  ;;  %642 = vst [vmem:[%s1080_s6 + $0x28] sm:$0xff] %v530_v19  ;;  %v674_v22 = vadd.f32 %v673_v16, %v530_v19  ;;  %v715_v23 = vmul.f32 %v530_v19, %v530_v19  ;;  %v313_v17 = vld [vmem:[%s1075_s28 + $0x68] sm:$0xff] }
 0x117   : > { %658 = vst [vmem:[%s1080_s6 + $0xa8] sm:$0xff] %v1179_v20 }
 0x118   : > { %v675_v29 = vadd.f32 %v674_v22, %v535_v0  ;;  %v746_v30 = vadd.f32 %v745_v21, %v715_v23  ;;  %v949_v31 = vpop.f32.mrb[8].mxu0  ;;  %v965_v33 = vpop.f32.mrb[8].mxu1  ;;  %v314_v0 = vld [vmem:[%s1075_s28 + $0x70] sm:$0xff] }
 0x119   : > { %v551_v37 = vadd.f32 %v949_v31, %v310_v24  ;;  %v542_v38 = vpop.f32.mrb[9].mxu0  ;;  %v1191_v40 = vadd.f32 %v965_v33, %v326_v25  ;;  %v606_v42 = vpop.f32.mrb[9].mxu1 }
 0x11a   : > { %v747_v43 = vadd.f32 %v746_v30, %v716_v28  ;;  %v543_v44 = vadd.f32 %v542_v38, %v308_v26  ;;  %v676_v46 = vadd.f32 %v675_v29, %v538_v12  ;;  %v950_v47 = vpop.f32.mrb[10].mxu0  ;;  %v1193_v49 = vadd.f32 %v606_v42, %v324_v27  ;;  %v966_v50 = vpop.f32.mrb[10].mxu1  ;;  %v331_v12 = vld [vmem:[%s1075_s28 + $0xf8] sm:$0xff]  ;;  %v329_v27 = vld [vmem:[%s1075_s28 + $0xe8] sm:$0xff] }
 0x11b   : > { %647 = vst [vmem:[%s1080_s6 + $0x50] sm:$0xff] %v551_v37  ;;  %v554_v52 = vadd.f32 %v950_v47, %v311_v32  ;;  %v545_v53 = vpop.f32.mrb[11].mxu0  ;;  %663 = vst [vmem:[%s1080_s6 + $0xd0] sm:$0xff] %v1191_v40  ;;  %v1199_v54 = vadd.f32 %v966_v50, %v327_v34  ;;  %v609_v55 = vpop.f32.mrb[11].mxu1  ;;  %v720_v5 = vmul.f32 %v551_v37, %v551_v37 }
 0x11c   : > { %645 = vst [vmem:[%s1080_s6 + $0x40] sm:$0xff] %v543_v44  ;;  %v677_v56 = vadd.f32 %v676_v46, %v543_v44  ;;  %v718_v57 = vmul.f32 %v543_v44, %v543_v44  ;;  %v748_v58 = vadd.f32 %v747_v43, %v717_v35  ;;  %v546_v59 = vadd.f32 %v545_v53, %v309_v39 }
 0x11d   : > { %661 = vst [vmem:[%s1080_s6 + $0xc0] sm:$0xff] %v1193_v49  ;;  %648 = vst [vmem:[%s1080_s6 + $0x58] sm:$0xff] %v554_v52  ;;  %v1207_v60 = vadd.f32 %v609_v55, %v325_v51  ;;  %v721_v13 = vmul.f32 %v554_v52, %v554_v52 }
 0x11e   : > { %664 = vst [vmem:[%s1080_s6 + $0xd8] sm:$0xff] %v1199_v54  ;;  %v749_v61 = vadd.f32 %v748_v58, %v718_v57  ;;  %646 = vst [vmem:[%s1080_s6 + $0x48] sm:$0xff] %v546_v59  ;;  %v678_v62 = vadd.f32 %v677_v56, %v546_v59  ;;  %v719_v63 = vmul.f32 %v546_v59, %v546_v59 }
 0x11f   : > { %662 = vst [vmem:[%s1080_s6 + $0xc8] sm:$0xff] %v1207_v60  ;;  %v727_v58 = vmul.f32 %v1148_v48, %v1148_v48  ;;  %v728_v59 = vmul.f32 %v1135_v36, %v1135_v36 }
 0x120   : > { %v679_v6 = vadd.f32 %v678_v62, %v551_v37  ;;  %v750_v7 = vadd.f32 %v749_v61, %v719_v63  ;;  %v953_v8 = vpop.f32.mrb[12].mxu0  ;;  %v969_v11 = vpop.f32.mrb[12].mxu1  ;;  %v729_v63 = vmul.f32 %v1143_v45, %v1143_v45 }
 0x121   : > { %v567_v15 = vadd.f32 %v953_v8, %v314_v0  ;;  %v558_v16 = vpop.f32.mrb[13].mxu0  ;;  %v1219_v18 = vadd.f32 %v969_v11, %v330_v1  ;;  %v622_v19 = vpop.f32.mrb[13].mxu1 }
 0x122   : > { %v751_v21 = vadd.f32 %v750_v7, %v720_v5  ;;  %v559_v22 = vadd.f32 %v558_v16, %v312_v2  ;;  %v680_v23 = vadd.f32 %v679_v6, %v554_v52  ;;  %v954_v24 = vpop.f32.mrb[14].mxu0  ;;  %v1221_v25 = vadd.f32 %v622_v19, %v328_v4  ;;  %v970_v26 = vpop.f32.mrb[14].mxu1 }
 0x123   : > { %651 = vst [vmem:[%s1080_s6 + $0x70] sm:$0xff] %v567_v15  ;;  %v570_v28 = vadd.f32 %v954_v24, %v315_v10  ;;  %v561_v29 = vpop.f32.mrb[15].mxu0  ;;  %667 = vst [vmem:[%s1080_s6 + $0xf0] sm:$0xff] %v1219_v18  ;;  %v1227_v30 = vadd.f32 %v970_v26, %v331_v12  ;;  %v625_v31 = vpop.f32.mrb[15].mxu1  ;;  %v724_v43 = vmul.f32 %v567_v15, %v567_v15 }
 0x124   : > { %649 = vst [vmem:[%s1080_s6 + $0x60] sm:$0xff] %v559_v22  ;;  %v681_v32 = vadd.f32 %v680_v23, %v559_v22  ;;  %v722_v33 = vmul.f32 %v559_v22, %v559_v22  ;;  %v752_v34 = vadd.f32 %v751_v21, %v721_v13  ;;  %v562_v35 = vadd.f32 %v561_v29, %v313_v17 }
 0x125   : > { %665 = vst [vmem:[%s1080_s6 + $0xe0] sm:$0xff] %v1221_v25  ;;  %652 = vst [vmem:[%s1080_s6 + $0x78] sm:$0xff] %v570_v28  ;;  %v626_v37 = vadd.f32 %v625_v31, %v329_v27  ;;  %v725_v47 = vmul.f32 %v570_v28, %v570_v28  ;;  %v726_v52 = vmul.f32 %v1138_v41, %v1138_v41 }
 0x126   : > { %668 = vst [vmem:[%s1080_s6 + $0xf8] sm:$0xff] %v1227_v30  ;;  %v753_v38 = vadd.f32 %v752_v34, %v722_v33  ;;  %650 = vst [vmem:[%s1080_s6 + $0x68] sm:$0xff] %v562_v35  ;;  %v682_v39 = vadd.f32 %v681_v32, %v562_v35  ;;  %v723_v42 = vmul.f32 %v562_v35, %v562_v35 }
 0x127   : > { %666 = vst [vmem:[%s1080_s6 + $0xe8] sm:$0xff] %v626_v37  ;;  %v731_v6 = vmul.f32 %v1179_v20, %v1179_v20  ;;  %v735_v16 = vmul.f32 %v1207_v60, %v1207_v60  ;;  %v739_v27 = vmul.f32 %v626_v37, %v626_v37  ;;  %v741_v31 = vmul.f32 %v1227_v30, %v1227_v30 }
 0x128   : > { %v683_v44 = vadd.f32 %v682_v39, %v567_v15  ;;  %v754_v46 = vadd.f32 %v753_v38, %v723_v42 }
 0x12a   : > { %v755_v50 = vadd.f32 %v754_v46, %v724_v43  ;;  %v684_v51 = vadd.f32 %v683_v44, %v570_v28  ;;  %v740_v28 = vmul.f32 %v1219_v18, %v1219_v18 }
 0x12c   : > { %v685_v53 = vadd.f32 %v684_v51, %v1138_v41  ;;  %v756_v55 = vadd.f32 %v755_v50, %v725_v47  ;;  %v730_v41 = vmul.f32 %v1165_v9, %v1165_v9 }
 0x12e   : > { %v757_v56 = vadd.f32 %v756_v55, %v726_v52  ;;  %v686_v57 = vadd.f32 %v685_v53, %v1148_v48 }
 0x130   : > { %v687_v61 = vadd.f32 %v686_v57, %v1135_v36  ;;  %v758_v62 = vadd.f32 %v757_v56, %v727_v58  ;;  %v732_v36 = vmul.f32 %v1163_v3, %v1163_v3 }
 0x132   : > { %v759_v0 = vadd.f32 %v758_v62, %v728_v59  ;;  %v688_v1 = vadd.f32 %v687_v61, %v1143_v45  ;;  %v733_v45 = vmul.f32 %v1171_v14, %v1171_v14 }
 0x134   : > { %v689_v2 = vadd.f32 %v688_v1, %v1165_v9  ;;  %v760_v4 = vadd.f32 %v759_v0, %v729_v63  ;;  %v734_v9 = vmul.f32 %v1193_v49, %v1193_v49 }
 0x136   : > { %v761_v5 = vadd.f32 %v760_v4, %v730_v41  ;;  %v690_v48 = vadd.f32 %v689_v2, %v1179_v20 }
 0x138   : > { %v691_v7 = vadd.f32 %v690_v48, %v1163_v3  ;;  %v762_v8 = vadd.f32 %v761_v5, %v731_v6  ;;  %v736_v3 = vmul.f32 %v1191_v40, %v1191_v40 }
 0x13a   : > { %v763_v10 = vadd.f32 %v762_v8, %v732_v36  ;;  %v692_v11 = vadd.f32 %v691_v7, %v1171_v14  ;;  %v737_v14 = vmul.f32 %v1199_v54, %v1199_v54 }
 0x13c   : > { %v693_v12 = vadd.f32 %v692_v11, %v1193_v49  ;;  %v764_v13 = vadd.f32 %v763_v10, %v733_v45  ;;  %v738_v49 = vmul.f32 %v1221_v25, %v1221_v25 }
 0x13e   : > { %v765_v15 = vadd.f32 %v764_v13, %v734_v9  ;;  %v694_v20 = vadd.f32 %v693_v12, %v1207_v60 }
 0x140   : > { %v695_v17 = vadd.f32 %v694_v20, %v1191_v40  ;;  %v766_v19 = vadd.f32 %v765_v15, %v735_v16 }
 0x142   : > { %v767_v21 = vadd.f32 %v766_v19, %v736_v3  ;;  %v696_v22 = vadd.f32 %v695_v17, %v1199_v54 }
 0x144   : > { %v697_v23 = vadd.f32 %v696_v22, %v1221_v25  ;;  %v768_v24 = vadd.f32 %v767_v21, %v737_v14 }
 0x146   : > { %v769_v26 = vadd.f32 %v768_v24, %v738_v49  ;;  %v698_v60 = vadd.f32 %v697_v23, %v626_v37 }
 0x148   : > { %v699_v40 = vadd.f32 %v698_v60, %v1219_v18  ;;  %v770_v29 = vadd.f32 %v769_v26, %v739_v27  ;;  %v669_v18 = vld [vmem:[%s1301_s4] sm:$0x1] }
 0x14a   : > { %v700_v54 = vadd.f32 %v699_v40, %v1227_v30  ;;  %v771_v32 = vadd.f32 %v770_v29, %v740_v28  ;;  %v709_v30 = vld [vmem:[%s1302_s5] sm:$0x1] }
 0x14c   : > { %v701_v33 = vrot.slane %v700_v54, 4  ;;  %v772_v34 = vadd.f32 %v771_v32, %v741_v31 }
 0x14e   : > { %v702_v35 = vadd.f32 %v701_v33, %v700_v54  ;;  %v773_v25 = vrot.slane %v772_v34, 4 }
 0x150   : > { %v703_v38 = vrot.slane %v702_v35, 2  ;;  %v774_v39 = vadd.f32 %v773_v25, %v772_v34 }
 0x152   : > { %v704_v42 = vadd.f32 %v703_v38, %v702_v35  ;;  %v775_v37 = vrot.slane %v774_v39, 2 }
 0x154   : > { %v705_v43 = vrot.slane %v704_v42, 1  ;;  %v776_v44 = vadd.f32 %v775_v37, %v774_v39 }
 0x156   : > { %v706_v46 = vadd.f32 %v705_v43, %v704_v42  ;;  %v777_v47 = vrot.slane %v776_v44, 1 }
 0x158   : > { %v707_v50 = vadd.f32 %v706_v46, %v669_v18  ;;  %v778_v51 = vadd.f32 %v777_v47, %v776_v44 }
 0x15a   : > { %708 = vst [vmem:[%s1301_s4] sm:$0x1] %v707_v50  ;;  %v779_v52 = vadd.f32 %v778_v51, %v709_v30 }
 0x15c   : > { %780 = vst [vmem:[%s1302_s5] sm:$0x1] %v779_v52 }
 0x15d PF: > { %s16_s18 = sadd.s32 1, %s1026_s18  }
 0x15e   : > { %p13_p5 = scmp.ge.s32.totalorder %s16_s18, 4  }
 0x160   :  { %15 = sbr.rel (!%p13_p5) target bundleno = 1 (0x1), region = 85 }

</bundles_post_ra>
